<compile_context>
chip_gen: v7x
topology: tpu7x:2x2x1
jax: 0.10.0
libtpu: 0.0.40
codegen_flags: <defaults>
</compile_context>

<pallas_src>
import jax
import jax.numpy as jnp
from jax.experimental import pallas as pl
from jax.experimental.pallas import tpu as pltpu


def _log_softmax_kernel(x_ref, o_ref):
    # Block: (nb, C, H, W).  The channel axis is a leading (non-vreg) dim, so
    # the max/sum reductions below are dense elementwise VPU ops over full
    # vregs -- no sublane padding, no XLU cross-lane reduction.
    x = x_ref[...]
    if x.dtype != jnp.float32:
        x = x.astype(jnp.float32)  # only emitted for bf16/fp8 inputs
    m = jnp.max(x, axis=1, keepdims=True)                 # (nb, 1, H, W)
    shifted = x - m
    denom = jnp.sum(jnp.exp(shifted), axis=1, keepdims=True)
    o_ref[...] = (shifted - jnp.log(denom)).astype(o_ref.dtype)


# ~2 MiB input blocks: good DMA/compute overlap, tiny VMEM footprint.
_TARGET_BLOCK_BYTES = 2 << 20


def _batch_block(n, per_elem_bytes):
    """Largest divisor of n whose input block stays under the byte target."""
    if n * per_elem_bytes <= _TARGET_BLOCK_BYTES:
        return n  # fuse the whole batch into one grid step
    best = 1
    for d in range(1, n + 1):
        if n % d == 0 and d * per_elem_bytes <= _TARGET_BLOCK_BYTES:
            best = d
    return best


def net_forward(x):
    """Equivalent of Net.forward: log_softmax(x, dim=1) for NCHW input."""
    n, c, h, w = x.shape
    itemsize = jnp.dtype(x.dtype).itemsize
    per_elem = c * h * w * itemsize

    bb = _batch_block(n, per_elem)
    steps = n // bb
    # Last two block dims equal the full array dims -> always a legal tiling,
    # and no relayout of the caller's native (N, C, H, W) array is needed.
    block = (bb, c, h, w)
    index_map = lambda i: (i, 0, 0, 0)

    # Single fused step: nothing to pipeline or shard -> "arbitrary".
    # Multi-step: batch blocks are independent -> "parallel" (megacore).
    dim_sem = ("arbitrary",) if steps == 1 else ("parallel",)

    compiler_kwargs = dict(dimension_semantics=dim_sem)
    # Input + output blocks are each double-buffered by default.
    vmem_needed = 4 * bb * per_elem
    if vmem_needed > (8 << 20):
        compiler_kwargs["vmem_limit_bytes"] = min(
            int(vmem_needed * 3 // 2), 48 << 20
        )

    s = h * w
    cost = pl.CostEstimate(
        flops=5 * n * c * s,                     # max/sub/add/sub over channels
        transcendentals=n * c * s + n * s,       # exp per element + log per pixel
        bytes_accessed=2 * n * c * s * itemsize, # read + write
    )

    return pl.pallas_call(
        _log_softmax_kernel,
        out_shape=jax.ShapeDtypeStruct(x.shape, x.dtype),
        grid_spec=pl.GridSpec(
            grid=(steps,),
            in_specs=[pl.BlockSpec(block, index_map)],
            out_specs=pl.BlockSpec(block, index_map),
        ),
        compiler_params=pltpu.CompilerParams(**compiler_kwargs),
        cost_estimate=cost,
        input_output_aliases={0: 0},
    )(x)


if __name__ == "__main__":
    # Shapes consistent with the module: INPUT_DEPTH=3, INPUT_SIZE=[96, 96].
    key = jax.random.PRNGKey(0)
    x = jax.random.normal(key, (2, 3, 96, 96), dtype=jnp.float32)

    # Reference computed first (output aliases the input buffer at the
    # custom-call level; XLA copy-protects non-donated inputs, but keep the
    # test order conservative).
    ref = jax.nn.log_softmax(x, axis=1)

    out = net_forward(x)
    out = jax.block_until_ready(out)

    # sanity 1: exp(log_softmax) sums to 1 over the channel dim
    assert out.shape == x.shape
    probs_sum = jnp.exp(out).sum(axis=1)
    assert bool(jnp.allclose(probs_sum, 1.0, atol=1e-4))

    # sanity 2: matches the XLA reference log_softmax over channels
    assert bool(jnp.allclose(out, ref, atol=1e-5))

    print("KERNEL_OK")
</pallas_src>

<mosaic_0001>
module attributes {stable_mosaic.version = 11 : i64} {
  func.func @_log_softmax_kernel(%arg0: i32, %arg1: memref<2x3x96x96xf32, #tpu.memory_space<vmem>>, %arg2: memref<2x3x96x96xf32, #tpu.memory_space<vmem>>) attributes {dimension_semantics = [#tpu.dimension_semantics<arbitrary>], iteration_bounds = array<i64: 1>, scalar_prefetch = 0 : i64, scratch_operands = 0 : i64, tpu.core_type = #tpu.core_type<tc>, window_params = [{transform_indices = @transform_0, window_bounds = array<i64: 2, 3, 96, 96>}, {transform_indices = @transform_1, window_bounds = array<i64: 2, 3, 96, 96>}]} {
    %c0 = arith.constant 0 : index
    %c0_0 = arith.constant 0 : index
    %c0_1 = arith.constant 0 : index
    %c0_2 = arith.constant 0 : index
    %0 = vector.load %arg1[%c0, %c0_0, %c0_1, %c0_2] : memref<2x3x96x96xf32, #tpu.memory_space<vmem>>, vector<2x3x96x96xf32>
    %cst = arith.constant dense<0xFF800000> : vector<2x96x96xf32>
    %1 = vector.multi_reduction <maximumf>, %0, %cst [1] : vector<2x3x96x96xf32> to vector<2x96x96xf32>
    %2 = vector.shape_cast %1 : vector<2x96x96xf32> to vector<2x1x96x96xf32>
    %3 = vector.broadcast %2 : vector<2x1x96x96xf32> to vector<2x3x96x96xf32>
    %4 = arith.subf %0, %3 : vector<2x3x96x96xf32>
    %5 = math.exp %4 : vector<2x3x96x96xf32>
    %cst_3 = arith.constant dense<0.000000e+00> : vector<2x96x96xf32>
    %6 = vector.multi_reduction <add>, %5, %cst_3 [1] : vector<2x3x96x96xf32> to vector<2x96x96xf32>
    %7 = vector.shape_cast %6 : vector<2x96x96xf32> to vector<2x1x96x96xf32>
    %8 = math.log %7 : vector<2x1x96x96xf32>
    %9 = vector.broadcast %8 : vector<2x1x96x96xf32> to vector<2x3x96x96xf32>
    %10 = arith.subf %4, %9 : vector<2x3x96x96xf32>
    %c0_4 = arith.constant 0 : index
    %c0_5 = arith.constant 0 : index
    %c0_6 = arith.constant 0 : index
    %c0_7 = arith.constant 0 : index
    %11 = vector.load %arg2[%c0_4, %c0_5, %c0_6, %c0_7] : memref<2x3x96x96xf32, #tpu.memory_space<vmem>>, vector<2x3x96x96xf32>
    tpu.vector_store %arg2[%c0_4, %c0_5, %c0_6, %c0_7], %10 {strides = array<i32>} : memref<2x3x96x96xf32, #tpu.memory_space<vmem>>, vector<2x3x96x96xf32>,
    return
  }
  func.func @transform_0(%arg0: i32) -> (i32, i32, i32, i32) {
    %c0_i32 = arith.constant 0 : i32
    %c0_i32_0 = arith.constant 0 : i32
    %c0_i32_1 = arith.constant 0 : i32
    %c0_i32_2 = arith.constant 0 : i32
    return %arg0, %c0_i32, %c0_i32_0, %c0_i32_1 : i32, i32, i32, i32
  }
  func.func @transform_1(%arg0: i32) -> (i32, i32, i32, i32) {
    %c0_i32 = arith.constant 0 : i32
    %c0_i32_0 = arith.constant 0 : i32
    %c0_i32_1 = arith.constant 0 : i32
    %c0_i32_2 = arith.constant 0 : i32
    return %arg0, %c0_i32, %c0_i32_0, %c0_i32_1 : i32, i32, i32, i32
  }
}

</mosaic_0001>

<bundles_post_ra>
// kernel: tpu_custom_call.1
= control target key start
LH: loop header
LB: loop body
LE: loop exit
PB: predicated region body
PF: predicated region fallthrough
CT: control target
= control target key end

     0   :  { %6 = vsyncpa [#allocation3], 0  ;;  %s1672_s0 = inlined_call_operand.hbm [shape: f32[2,3,96,96], index: 0, kind: input, shape index: {}, may-alias: {0,1}]   ;;  %s1673_s1 = inlined_call_operand.hbm [shape: f32[2,3,96,96], index: 1, kind: output, shape index: {}, may-alias: {0,1}]  }
   0x1   :  { %7 = vsyncpa [#allocation4], 0  ;;  %s1005_s6 = smov [#allocation2]   ;;  %s957_s10 = scalar_lea.hbm %s1672_s0, 9216 }
   0x2   :  { %s13_s7 = sshll.u32 %s1005_s6, 4  ;;  %p958_p0 = scmp.ne.s32.totalorder %s1672_s0, %s957_s10  ;;  %s14_s7 = int_to_ptr.vmem [resolvable:$true] %s13_s7 }
   0x3   :  { %p961_p1 = scmp.lt.u32.totalorder %s957_s10, %s1672_s0 }
   0x5   :  { %p963_p2 = pnand %p961_p1, %p958_p0 }
   0x7   :  { %966 = shalt.err (!%p963_p2)
}
   0x8   :  { %s967_s15 = scalar_lea.vmem %s14_s7, 9216  ;;  %p972_p4 = scmp.lt.s32.totalorder %s14_s7, %s14_s7 }
   0x9   :  { %p968_p3 = scmp.ne.s32.totalorder %s14_s7, %s967_s15  ;;  %p973_p5 = scmp.lt.s32.totalorder %s967_s15, %s967_s15 }
   0xb   :  { %p974_p6 = por %p973_p5, %p972_p4 }
   0xd   :  { %p975_p7 = pnand %p974_p6, %p968_p3 }
   0xf   :  { %978 = shalt.err (!%p975_p7)
}
  0x10   :  { %s1006_s16 = smov 128   ;;  %s1007_s17 = smov 8  }
  0x11   :  { %19 = dma.hbm_to_vmem [thread:$0]  %s1672_s0, 9216, %s14_s7, [#allocation3], %s1006_s16, %s1006_s16, %s1007_s17  }
  0x12   :  { %1001 = dma.done.wait [#allocation3], 9216  }
  0x13   :  { %1002 = vsyncadd [#allocation3], 4294958080  ;;  %vm95_vm0 = vcmask 785408   ;;  %v23_v0 = vld [vmem:[#allocation2] sm:$0xff]  ;;  %v24_v6 = vld [vmem:[#allocation2 + $0x8] sm:$0xff]  ;;  %s1008_s0 = smov [#allocation5]  }
  0x14   :  { %v35_v1 = vld [vmem:[#allocation2 + $0x60] sm:$0xff]  ;;  %v96_v3 = vsel %vm95_vm0, %v23_v0, -inf  ;;  %v36_v7 = vld [vmem:[#allocation2 + $0x68] sm:$0xff]  ;;  %v101_v10 = vsel %vm95_vm0, %v24_v6, -inf  ;;  %v25_v13 = vld [vmem:[#allocation2 + $0x10] sm:$0xff]  ;;  %s749_s20 = sshll.u32 %s1008_s0, 4  ;;  %s750_s20 = int_to_ptr.vmem [resolvable:$true] %s749_s20 }
  0x15   :  { %v47_v2 = vld [vmem:[#allocation2 + $0xc0] sm:$0xff]  ;;  %v97_v4 = vsel %vm95_vm0, %v35_v1, -inf  ;;  %v48_v8 = vld [vmem:[#allocation2 + $0xc8] sm:$0xff]  ;;  %v102_v11 = vsel %vm95_vm0, %v36_v7, -inf  ;;  %v37_v14 = vld [vmem:[#allocation2 + $0x70] sm:$0xff]  ;;  %v106_v17 = vsel %vm95_vm0, %v25_v13, -inf  ;;  %p984_p9 = scmp.lt.s32.totalorder %s750_s20, %s750_s20 }
  0x16   :  { %v99_v5 = vsel %vm95_vm0, %v47_v2, -inf  ;;  %v98_v9 = vmax.f32 %v96_v3, %v97_v4  ;;  %v104_v12 = vsel %vm95_vm0, %v48_v8, -inf  ;;  %v49_v15 = vld [vmem:[#allocation2 + $0xd0] sm:$0xff]  ;;  %v103_v16 = vmax.f32 %v101_v10, %v102_v11  ;;  %v26_v20 = vld [vmem:[#allocation2 + $0x18] sm:$0xff]  ;;  %v27_v27 = vld [vmem:[#allocation2 + $0x20] sm:$0xff]  ;;  %s979_s21 = scalar_lea.vmem %s750_s20, 9216 }
  0x17   :  { %v107_v18 = vsel %vm95_vm0, %v37_v14, -inf  ;;  %v109_v19 = vsel %vm95_vm0, %v49_v15, -inf  ;;  %v38_v21 = vld [vmem:[#allocation2 + $0x78] sm:$0xff]  ;;  %v111_v25 = vsel %vm95_vm0, %v26_v20, -inf  ;;  %v116_v31 = vsel %vm95_vm0, %v27_v27, -inf  ;;  %v39_v40 = vld [vmem:[#allocation2 + $0x80] sm:$0xff]  ;;  %p980_p8 = scmp.ne.s32.totalorder %s750_s20, %s979_s21  ;;  %p985_p10 = scmp.lt.s32.totalorder %s979_s21, %s979_s21 }
  0x18   :  { %v50_v22 = vld [vmem:[#allocation2 + $0xd8] sm:$0xff]  ;;  %v100_v23 = vmax.f32 %v98_v9, %v99_v5  ;;  %v108_v24 = vmax.f32 %v106_v17, %v107_v18  ;;  %v112_v26 = vsel %vm95_vm0, %v38_v21, -inf  ;;  %v105_v28 = vmax.f32 %v103_v16, %v104_v12  ;;  %v51_v52 = vld [vmem:[#allocation2 + $0xe0] sm:$0xff]  ;;  %v28_v56 = vld [vmem:[#allocation2 + $0x28] sm:$0xff] }
  0x19   :  { %v113_v29 = vmax.f32 %v111_v25, %v112_v26  ;;  %v114_v30 = vsel %vm95_vm0, %v50_v22, -inf  ;;  %v40_v57 = vld [vmem:[#allocation2 + $0x88] sm:$0xff]  ;;  %v117_v61 = vsel %vm95_vm0, %v39_v40, -inf  ;;  %v29_v62 = vld [vmem:[#allocation2 + $0x30] sm:$0xff]  ;;  %v119_v4 = vsel %vm95_vm0, %v51_v52, -inf  ;;  %v1088_v10 = vld [vmem:[#allocation2 + $0x38] sm:$0xff]  ;;  %p986_p11 = por %p985_p10, %p984_p9 }
  0x1a   :  { %v1047_v32 = vsub.f32 %v23_v0, %v100_v23  ;;  %v1049_v33 = vsub.f32 %v35_v1, %v100_v23  ;;  %v1051_v34 = vsub.f32 %v47_v2, %v100_v23  ;;  %v110_v35 = vmax.f32 %v108_v24, %v109_v19  ;;  %v52_v58 = vld [vmem:[#allocation2 + $0xe8] sm:$0xff]  ;;  %v41_v2 = vld [vmem:[#allocation2 + $0x90] sm:$0xff]  ;;  %v1099_v19 = vld [vmem:[#allocation2 + $0x98] sm:$0xff] }
  0x1b   :  { %v1053_v36 = vsub.f32 %v24_v6, %v105_v28  ;;  %v1055_v37 = vsub.f32 %v36_v7, %v105_v28  ;;  %v1057_v38 = vsub.f32 %v48_v8, %v105_v28  ;;  %v115_v39 = vmax.f32 %v113_v29, %v114_v30  ;;  %v53_v3 = vld [vmem:[#allocation2 + $0xf0] sm:$0xff]  ;;  %p987_p12 = pnand %p986_p11, %p980_p8 }
  0x1c   :  { %v288_v41 = vmul.f32 1.442695, %v1047_v32  ;;  %v312_v42 = vmul.f32 1.442695, %v1049_v33  ;;  %v336_v43 = vmul.f32 1.442695, %v1051_v34  ;;  %v1062_v44 = vsub.f32 %v25_v13, %v110_v35 }
  0x1d   :  { %v290_v45 = vmul.f32 1.442695, %v1053_v36  ;;  %v314_v46 = vmul.f32 1.442695, %v1055_v37  ;;  %v338_v47 = vmul.f32 1.442695, %v1057_v38  ;;  %v1067_v48 = vsub.f32 %v37_v14, %v110_v35 }
  0x1e   :  { %765 = vpow2.f32 %v288_v41  ;;  %v1069_v49 = vsub.f32 %v49_v15, %v110_v35  ;;  %v292_v50 = vmul.f32 1.442695, %v1062_v44  ;;  %v1072_v51 = vsub.f32 %v26_v20, %v115_v39 }
  0x1f   :  { %767 = vpow2.f32 %v312_v42  ;;  %v316_v53 = vmul.f32 1.442695, %v1067_v48  ;;  %v1075_v54 = vsub.f32 %v38_v21, %v115_v39  ;;  %v1077_v55 = vsub.f32 %v50_v22, %v115_v39 }
  0x20   :  { %769 = vpow2.f32 %v336_v43  ;;  %v340_v59 = vmul.f32 1.442695, %v1069_v49  ;;  %v294_v60 = vmul.f32 1.442695, %v1072_v51  ;;  %v118_v1 = vmax.f32 %v116_v31, %v117_v61 }
  0x21   :  { %771 = vpow2.f32 %v290_v45  ;;  %v318_v63 = vmul.f32 1.442695, %v1075_v54  ;;  %v342_v0 = vmul.f32 1.442695, %v1077_v55  ;;  %v121_v5 = vsel %vm95_vm0, %v28_v56, -inf }
  0x22   :  { %773 = vpow2.f32 %v314_v46  ;;  %v122_v6 = vsel %vm95_vm0, %v40_v57, -inf  ;;  %v120_v7 = vmax.f32 %v118_v1, %v119_v4  ;;  %v124_v9 = vsel %vm95_vm0, %v52_v58, -inf  ;;  %v54_v1 = vld [vmem:[#allocation2 + $0xf8] sm:$0xff] }
  0x23   :  { %775 = vpow2.f32 %v338_v47  ;;  %v123_v8 = vmax.f32 %v121_v5, %v122_v6  ;;  %v126_v11 = vsel %vm95_vm0, %v29_v62, -inf  ;;  %v127_v12 = vsel %vm95_vm0, %v41_v2, -inf  ;;  %v1133_v6 = vld [vmem:[#allocation2 + $0x40] sm:$0xff] }
  0x24   :  { %777 = vpow2.f32 %v292_v50  ;;  %v129_v13 = vsel %vm95_vm0, %v53_v3, -inf  ;;  %v1093_v14 = vsub.f32 %v27_v27, %v120_v7  ;;  %v1095_v15 = vsub.f32 %v39_v40, %v120_v7 }
  0x25   :  { %779 = vpow2.f32 %v316_v53  ;;  %v1097_v16 = vsub.f32 %v51_v52, %v120_v7  ;;  %v125_v17 = vmax.f32 %v123_v8, %v124_v9  ;;  %v128_v18 = vmax.f32 %v126_v11, %v127_v12  ;;  %v43_v11 = vld [vmem:[#allocation2 + $0xa0] sm:$0xff] }
  0x26   :  { %781 = vpow2.f32 %v340_v59  ;;  %v131_v20 = vsel %vm95_vm0, %v1088_v10, -inf  ;;  %v296_v21 = vmul.f32 1.442695, %v1093_v14  ;;  %v320_v22 = vmul.f32 1.442695, %v1095_v15 }
  0x27   :  { %783 = vpow2.f32 %v294_v60  ;;  %v344_v23 = vmul.f32 1.442695, %v1097_v16  ;;  %v1106_v25 = vsub.f32 %v28_v56, %v125_v17  ;;  %v1108_v26 = vsub.f32 %v40_v57, %v125_v17 }
  0x28   :  { %v766_v24 = vpop.eup %765  ;;  %785 = vpow2.f32 %v318_v63  ;;  %v1110_v27 = vsub.f32 %v52_v58, %v125_v17  ;;  %v130_v30 = vmax.f32 %v128_v18, %v129_v13  ;;  %v132_v31 = vsel %vm95_vm0, %v1099_v19, -inf }
  0x29   :  { %v768_v28 = vpop.eup %767  ;;  %v432_v29 = vsel %vm95_vm0, %v766_v24, 0.0  ;;  %787 = vpow2.f32 %v342_v0  ;;  %v298_v40 = vmul.f32 1.442695, %v1106_v25  ;;  %v322_v41 = vmul.f32 1.442695, %v1108_v26 }
  0x2a   :  { %v770_v35 = vpop.eup %769  ;;  %v433_v39 = vsel %vm95_vm0, %v768_v28, 0.0  ;;  %789 = vpow2.f32 %v296_v21  ;;  %v346_v46 = vmul.f32 1.442695, %v1110_v27  ;;  %v1121_v52 = vsub.f32 %v29_v62, %v130_v30 }
  0x2b   :  { %v772_v42 = vpop.eup %771  ;;  %v434_v43 = vadd.f32 %v433_v39, %v432_v29  ;;  %v435_v45 = vsel %vm95_vm0, %v770_v35, 0.0  ;;  %791 = vpow2.f32 %v320_v22  ;;  %v1123_v53 = vsub.f32 %v41_v2, %v130_v30 }
  0x2c   :  { %v774_v47 = vpop.eup %773  ;;  %v437_v50 = vsel %vm95_vm0, %v772_v42, 0.0  ;;  %793 = vpow2.f32 %v344_v23  ;;  %v1126_v59 = vsub.f32 %v53_v3, %v130_v30  ;;  %v300_v0 = vmul.f32 1.442695, %v1121_v52 }
  0x2d   :  { %v776_v56 = vpop.eup %775  ;;  %v436_v57 = vadd.f32 %v435_v45, %v434_v43  ;;  %v438_v58 = vsel %vm95_vm0, %v774_v47, 0.0  ;;  %795 = vpow2.f32 %v298_v40  ;;  %v324_v2 = vmul.f32 1.442695, %v1123_v53  ;;  %v1153_v47 = vld [vmem:[#allocation2 + $0x48] sm:$0xff] }
  0x2e   :  { %v778_v60 = vpop.eup %777  ;;  %v439_v61 = vadd.f32 %v438_v58, %v437_v50  ;;  %v440_v63 = vsel %vm95_vm0, %v776_v56, 0.0  ;;  %797 = vpow2.f32 %v322_v41  ;;  %v348_v5 = vmul.f32 1.442695, %v1126_v59 }
  0x2f   :  { %v780_v4 = vpop.eup %779  ;;  %799 = vlog2.f32 %v436_v57  ;;  %v442_v62 = vsel %vm95_vm0, %v778_v60, 0.0  ;;  %v133_v9 = vmax.f32 %v131_v20, %v132_v31  ;;  %v134_v18 = vsel %vm95_vm0, %v54_v1, -inf }
  0x30   :  { %v782_v3 = vpop.eup %781  ;;  %v441_v7 = vadd.f32 %v440_v63, %v439_v61  ;;  %v443_v8 = vsel %vm95_vm0, %v780_v4, 0.0  ;;  %801 = vpow2.f32 %v346_v46  ;;  %v136_v24 = vsel %vm95_vm0, %v1133_v6, -inf  ;;  %v55_v46 = vld [vmem:[#allocation2 + $0x100] sm:$0xff] }
  0x31   :  { %v784_v12 = vpop.eup %783  ;;  %v444_v13 = vadd.f32 %v443_v8, %v442_v62  ;;  %v445_v17 = vsel %vm95_vm0, %v782_v3, 0.0  ;;  %803 = vpow2.f32 %v300_v0  ;;  %v135_v23 = vmax.f32 %v133_v9, %v134_v18 }
  0x32   :  { %v786_v21 = vpop.eup %785  ;;  %805 = vlog2.f32 %v441_v7  ;;  %v447_v22 = vsel %vm95_vm0, %v784_v12, 0.0  ;;  %v137_v30 = vsel %vm95_vm0, %v43_v11, -inf }
  0x33   :  { %v788_v28 = vpop.eup %787  ;;  %v446_v29 = vadd.f32 %v445_v17, %v444_v13  ;;  %v448_v20 = vsel %vm95_vm0, %v786_v21, 0.0  ;;  %807 = vpow2.f32 %v324_v2  ;;  %v1145_v40 = vsub.f32 %v1088_v10, %v135_v23 }
  0x34   :  { %v790_v31 = vpop.eup %789  ;;  %v449_v35 = vadd.f32 %v448_v20, %v447_v22  ;;  %v450_v39 = vsel %vm95_vm0, %v788_v28, 0.0  ;;  %809 = vpow2.f32 %v348_v5  ;;  %v1149_v43 = vsub.f32 %v1099_v19, %v135_v23  ;;  %v56_v28 = vld [vmem:[#allocation2 + $0x108] sm:$0xff] }
  0x35   :  { %v792_v41 = vpop.eup %791  ;;  %811 = vlog2.f32 %v446_v29  ;;  %v452_v42 = vsel %vm95_vm0, %v790_v31, 0.0  ;;  %v1151_v45 = vsub.f32 %v54_v1, %v135_v23  ;;  %v302_v58 = vmul.f32 1.442695, %v1145_v40  ;;  %v44_v1 = vld [vmem:[#allocation2 + $0xa8] sm:$0xff] }
  0x36   :  { %v794_v50 = vpop.eup %793  ;;  %v451_v56 = vadd.f32 %v450_v39, %v449_v35  ;;  %v453_v57 = vsel %vm95_vm0, %v792_v41, 0.0  ;;  %v138_v10 = vmax.f32 %v136_v24, %v137_v30  ;;  %v326_v0 = vmul.f32 1.442695, %v1149_v43 }
  0x37   :  { %v796_v60 = vpop.eup %795  ;;  %v454_v61 = vadd.f32 %v453_v57, %v452_v42  ;;  %v455_v63 = vsel %vm95_vm0, %v794_v50, 0.0  ;;  %v350_v19 = vmul.f32 1.442695, %v1151_v45  ;;  %v139_v2 = vsel %vm95_vm0, %v55_v46, -inf  ;;  %v33_v57 = vld [vmem:[#allocation2 + $0x50] sm:$0xff] }
  0x38   :  { %v798_v4 = vpop.eup %797  ;;  %813 = vlog2.f32 %v451_v56  ;;  %v457_v62 = vsel %vm95_vm0, %v796_v60, 0.0  ;;  %v141_v5 = vsel %vm95_vm0, %v1153_v47, -inf  ;;  %v140_v9 = vmax.f32 %v138_v10, %v139_v2  ;;  %v57_v10 = vld [vmem:[#allocation2 + $0x110] sm:$0xff] }
  0x39   :  { %v800_v3 = vpop.eup %799  ;;  %v456_v7 = vadd.f32 %v455_v63, %v454_v61  ;;  %v458_v8 = vsel %vm95_vm0, %v798_v4, 0.0  ;;  %815 = vpow2.f32 %v302_v58  ;;  %v142_v18 = vsel %vm95_vm0, %v44_v1, -inf  ;;  %v45_v58 = vld [vmem:[#allocation2 + $0xb0] sm:$0xff] }
  0x3a   :  { %v802_v12 = vpop.eup %801  ;;  %v1165_v13 = vmul.f32 0.6931472, %v800_v3  ;;  %v459_v17 = vadd.f32 %v458_v8, %v457_v62  ;;  %817 = vpow2.f32 %v326_v0  ;;  %v1170_v23 = vsub.f32 %v1133_v6, %v140_v9 }
  0x3b   :  { %v804_v21 = vpop.eup %803  ;;  %819 = vlog2.f32 %v456_v7  ;;  %v460_v22 = vsel %vm95_vm0, %v802_v12, 0.0  ;;  %v1172_v24 = vsub.f32 %v43_v11, %v140_v9  ;;  %v1179_v41 = vsub.f32 %v55_v46, %v140_v9 }
  0x3c   :  { %v806_v29 = vpop.eup %805  ;;  %v600_v20 = vsub.f32 %v1047_v32, %v1165_v13  ;;  %v461_v30 = vadd.f32 %v460_v22, %v459_v17  ;;  %v462_v31 = vsel %vm95_vm0, %v804_v21, 0.0  ;;  %821 = vpow2.f32 %v350_v19 }
  0x3d   :  { %v808_v35 = vpop.eup %807  ;;  %v1177_v39 = vmul.f32 0.6931472, %v806_v29  ;;  %v304_v42 = vmul.f32 1.442695, %v1170_v23  ;;  %v328_v6 = vmul.f32 1.442695, %v1172_v24  ;;  %v143_v32 = vmax.f32 %v141_v5, %v142_v18 }
  0x3e   :  { %v810_v11 = vpop.eup %809  ;;  %672 = vst.msk [vmem:[#allocation5] sm:$0xff] %vm95_vm0, %v600_v20  ;;  %823 = vlog2.f32 %v461_v30  ;;  %v463_v50 = vsel %vm95_vm0, %v808_v35, 0.0  ;;  %v144_v56 = vsel %vm95_vm0, %v56_v28, -inf  ;;  %v352_v19 = vmul.f32 1.442695, %v1179_v41  ;;  %v46_v29 = vld [vmem:[#allocation2 + $0xb8] sm:$0xff] }
  0x3f   :  { %v812_v60 = vpop.eup %811  ;;  %v601_v46 = vsub.f32 %v1053_v36, %v1177_v39  ;;  %v464_v61 = vadd.f32 %v463_v50, %v462_v31  ;;  %v465_v63 = vsel %vm95_vm0, %v810_v11, 0.0  ;;  %825 = vpow2.f32 %v304_v42  ;;  %v1196_v36 = vld [vmem:[#allocation2 + $0x58] sm:$0xff] }
  0x40   :  { %v1189_v0 = vmul.f32 0.6931472, %v812_v60  ;;  %827 = vpow2.f32 %v328_v6  ;;  %v145_v4 = vmax.f32 %v143_v32, %v144_v56  ;;  %v146_v2 = vsel %vm95_vm0, %v33_v57, -inf }
  0x41   :  { %673 = vst.msk [vmem:[#allocation5 + $0x8] sm:$0xff] %vm95_vm0, %v601_v46  ;;  %v466_v62 = vadd.f32 %v465_v63, %v464_v61  ;;  %v147_v5 = vsel %vm95_vm0, %v45_v58, -inf  ;;  %v149_v3 = vsel %vm95_vm0, %v57_v10, -inf  ;;  %829 = vpow2.f32 %v352_v19  ;;  %v58_v61 = vld [vmem:[#allocation2 + $0x118] sm:$0xff] }
  0x42   :  { %v814_v7 = vpop.eup %813  ;;  %v602_v8 = vsub.f32 %v1062_v44, %v1189_v0  ;;  %v1201_v9 = vsub.f32 %v1153_v47, %v145_v4  ;;  %v1203_v12 = vsub.f32 %v44_v1, %v145_v4  ;;  %v1207_v21 = vsub.f32 %v56_v28, %v145_v4 }
  0x43   :  { %v816_v17 = vpop.eup %815  ;;  %v1205_v18 = vmul.f32 0.6931472, %v814_v7  ;;  %831 = vlog2.f32 %v466_v62  ;;  %v148_v22 = vmax.f32 %v146_v2, %v147_v5  ;;  %v151_v1 = vsel %vm95_vm0, %v1196_v36, -inf }
  0x44   :  { %v818_v20 = vpop.eup %817  ;;  %674 = vst.msk [vmem:[#allocation5 + $0x10] sm:$0xff] %vm95_vm0, %v602_v8  ;;  %v467_v30 = vsel %vm95_vm0, %v816_v17, 0.0  ;;  %v306_v44 = vmul.f32 1.442695, %v1201_v9  ;;  %v330_v47 = vmul.f32 1.442695, %v1203_v12 }
  0x45   :  { %v820_v31 = vpop.eup %819  ;;  %v603_v35 = vsub.f32 %v1072_v51, %v1205_v18  ;;  %v468_v28 = vsel %vm95_vm0, %v818_v20, 0.0  ;;  %v354_v42 = vmul.f32 1.442695, %v1207_v21  ;;  %v150_v6 = vmax.f32 %v148_v22, %v149_v3 }
  0x46   :  { %v822_v11 = vpop.eup %821  ;;  %v1219_v50 = vmul.f32 0.6931472, %v820_v31  ;;  %v469_v32 = vadd.f32 %v468_v28, %v467_v30  ;;  %833 = vpow2.f32 %v306_v44  ;;  %v152_v56 = vsel %vm95_vm0, %v46_v29, -inf }
  0x47   :  { %675 = vst.msk [vmem:[#allocation5 + $0x18] sm:$0xff] %vm95_vm0, %v603_v35  ;;  %v470_v60 = vsel %vm95_vm0, %v822_v11, 0.0  ;;  %835 = vpow2.f32 %v330_v47  ;;  %v1224_v46 = vsub.f32 %v33_v57, %v150_v6  ;;  %v1226_v51 = vsub.f32 %v45_v58, %v150_v6 }
  0x48   :  { %v824_v63 = vpop.eup %823  ;;  %v604_v19 = vsub.f32 %v1093_v14, %v1219_v50  ;;  %v471_v4 = vadd.f32 %v470_v60, %v469_v32  ;;  %837 = vpow2.f32 %v354_v42  ;;  %v1230_v62 = vsub.f32 %v57_v10, %v150_v6 }
  0x49   :  { %v826_v2 = vpop.eup %825  ;;  %v1232_v5 = vmul.f32 0.6931472, %v824_v63  ;;  %v308_v3 = vmul.f32 1.442695, %v1224_v46  ;;  %v332_v7 = vmul.f32 1.442695, %v1226_v51  ;;  %v153_v57 = vmax.f32 %v151_v1, %v152_v56 }
  0x4a   :  { %v828_v8 = vpop.eup %827  ;;  %676 = vst.msk [vmem:[#allocation5 + $0x20] sm:$0xff] %vm95_vm0, %v604_v19  ;;  %839 = vlog2.f32 %v471_v4  ;;  %v472_v58 = vsel %vm95_vm0, %v826_v2, 0.0  ;;  %v356_v14 = vmul.f32 1.442695, %v1230_v62  ;;  %v154_v17 = vsel %vm95_vm0, %v58_v61, -inf }
  0x4b   :  { %v605_v10 = vsub.f32 %v1106_v25, %v1232_v5  ;;  %v473_v22 = vsel %vm95_vm0, %v828_v8, 0.0  ;;  %841 = vpow2.f32 %v308_v3  ;;  %v155_v20 = vmax.f32 %v153_v57, %v154_v17  ;;  %v830_v30 = vpop.eup %829  ;;  %v1289_v8 = vld [vmem:[#allocation2 + $0x128] sm:$0xff] }
  0x4c   :  { %v474_v44 = vadd.f32 %v473_v22, %v472_v58  ;;  %843 = vpow2.f32 %v332_v7  ;;  %v612_v47 = vsub.f32 %v1049_v33, %v1165_v13  ;;  %v613_v1 = vsub.f32 %v1055_v37, %v1177_v39  ;;  %v71_v7 = vld [vmem:[#allocation2 + $0x180] sm:$0xff]  ;;  %v1291_v58 = vld [vmem:[#allocation2 + $0x188] sm:$0xff] }
  0x4d   :  { %v832_v31 = vpop.eup %831  ;;  %677 = vst.msk [vmem:[#allocation5 + $0x28] sm:$0xff] %vm95_vm0, %v605_v10  ;;  %v475_v35 = vsel %vm95_vm0, %v830_v30, 0.0  ;;  %845 = vpow2.f32 %v356_v14  ;;  %v1250_v25 = vsub.f32 %v1196_v36, %v155_v20  ;;  %v1252_v28 = vsub.f32 %v46_v29, %v155_v20 }
  0x4e   :  { %v565_v42 = vmul.f32 0.6931472, %v832_v31  ;;  %v476_v6 = vadd.f32 %v475_v35, %v474_v44  ;;  %v1254_v11 = vsub.f32 %v58_v61, %v155_v20  ;;  %684 = vst.msk [vmem:[#allocation5 + $0x60] sm:$0xff] %vm95_vm0, %v612_v47  ;;  %685 = vst.msk [vmem:[#allocation5 + $0x68] sm:$0xff] %vm95_vm0, %v613_v1  ;;  %v614_v33 = vsub.f32 %v1067_v48, %v1189_v0  ;;  %v1314_v44 = vld [vmem:[#allocation2 + $0x190] sm:$0xff] }
  0x4f   :  { %v310_v37 = vmul.f32 1.442695, %v1250_v25  ;;  %v334_v32 = vmul.f32 1.442695, %v1252_v28  ;;  %v615_v36 = vsub.f32 %v1075_v54, %v1205_v18  ;;  %v616_v29 = vsub.f32 %v1095_v15, %v1219_v50 }
  0x50   :  { %v834_v56 = vpop.eup %833  ;;  %v606_v60 = vsub.f32 %v1121_v52, %v565_v42  ;;  %847 = vlog2.f32 %v476_v6  ;;  %v358_v61 = vmul.f32 1.442695, %v1254_v11  ;;  %686 = vst.msk [vmem:[#allocation5 + $0x70] sm:$0xff] %vm95_vm0, %v614_v33  ;;  %v617_v48 = vsub.f32 %v1108_v26, %v1232_v5  ;;  %v59_v52 = vld [vmem:[#allocation2 + $0x120] sm:$0xff] }
  0x51   :  { %v836_v63 = vpop.eup %835  ;;  %v477_v19 = vsel %vm95_vm0, %v834_v56, 0.0  ;;  %849 = vpow2.f32 %v310_v37  ;;  %687 = vst.msk [vmem:[#allocation5 + $0x78] sm:$0xff] %vm95_vm0, %v615_v36  ;;  %688 = vst.msk [vmem:[#allocation5 + $0x80] sm:$0xff] %vm95_vm0, %v616_v29  ;;  %v618_v54 = vsub.f32 %v1123_v53, %v565_v42  ;;  %v624_v15 = vsub.f32 %v1051_v34, %v1165_v13  ;;  %v83_v53 = vld [vmem:[#allocation2 + $0x1e0] sm:$0xff] }
  0x52   :  { %v838_v4 = vpop.eup %837  ;;  %678 = vst.msk [vmem:[#allocation5 + $0x30] sm:$0xff] %vm95_vm0, %v606_v60  ;;  %v478_v2 = vsel %vm95_vm0, %v836_v63, 0.0  ;;  %851 = vpow2.f32 %v334_v32  ;;  %689 = vst.msk [vmem:[#allocation5 + $0x88] sm:$0xff] %vm95_vm0, %v617_v48  ;;  %v625_v26 = vsub.f32 %v1057_v38, %v1177_v39  ;;  %v626_v3 = vsub.f32 %v1069_v49, %v1189_v0  ;;  %v85_v32 = vld [vmem:[#allocation2 + $0x1f0] sm:$0xff] }
  0x53   :  { %v479_v57 = vadd.f32 %v478_v2, %v477_v19  ;;  %v480_v34 = vsel %vm95_vm0, %v838_v4, 0.0  ;;  %853 = vpow2.f32 %v358_v61  ;;  %690 = vst.msk [vmem:[#allocation5 + $0x90] sm:$0xff] %vm95_vm0, %v618_v54  ;;  %696 = vst.msk [vmem:[#allocation5 + $0xc0] sm:$0xff] %vm95_vm0, %v624_v15  ;;  %v627_v13 = vsub.f32 %v1077_v55, %v1205_v18 }
  0x54   :  { %v840_v38 = vpop.eup %839  ;;  %697 = vst.msk [vmem:[#allocation5 + $0xc8] sm:$0xff] %vm95_vm0, %v625_v26  ;;  %698 = vst.msk [vmem:[#allocation5 + $0xd0] sm:$0xff] %vm95_vm0, %v626_v3  ;;  %v628_v49 = vsub.f32 %v1097_v16, %v1219_v50  ;;  %v629_v39 = vsub.f32 %v1110_v27, %v1232_v5  ;;  %v630_v0 = vsub.f32 %v1126_v59, %v565_v42  ;;  %v156_v14 = vsel %vm95_vm0, %v59_v52, -inf  ;;  %v84_v27 = vld [vmem:[#allocation2 + $0x1e8] sm:$0xff]  ;;  %v1312_v5 = vld [vmem:[#allocation2 + $0x130] sm:$0xff] }
  0x55   :  { %v842_v55 = vpop.eup %841  ;;  %v567_v18 = vmul.f32 0.6931472, %v840_v38  ;;  %v481_v17 = vadd.f32 %v480_v34, %v479_v57  ;;  %699 = vst.msk [vmem:[#allocation5 + $0xd8] sm:$0xff] %vm95_vm0, %v627_v13  ;;  %v157_v10 = vsel %vm95_vm0, %v71_v7, -inf  ;;  %v159_v22 = vsel %vm95_vm0, %v83_v53, -inf  ;;  %v1343_v38 = vld [vmem:[#allocation2 + $0x138] sm:$0xff] }
  0x56   :  { %v844_v20 = vpop.eup %843  ;;  %v482_v30 = vsel %vm95_vm0, %v842_v55, 0.0  ;;  %700 = vst.msk [vmem:[#allocation5 + $0xe0] sm:$0xff] %vm95_vm0, %v628_v49  ;;  %701 = vst.msk [vmem:[#allocation5 + $0xe8] sm:$0xff] %vm95_vm0, %v629_v39  ;;  %v158_v16 = vmax.f32 %v156_v14, %v157_v10  ;;  %v161_v59 = vsel %vm95_vm0, %v1289_v8, -inf  ;;  %v162_v50 = vsel %vm95_vm0, %v1291_v58, -inf }
  0x57   :  { %702 = vst.msk [vmem:[#allocation5 + $0xf0] sm:$0xff] %vm95_vm0, %v630_v0  ;;  %v846_v47 = vpop.eup %845  ;;  %v607_v1 = vsub.f32 %v1145_v40, %v567_v18  ;;  %855 = vlog2.f32 %v481_v17  ;;  %v483_v31 = vsel %vm95_vm0, %v844_v20, 0.0  ;;  %v619_v35 = vsub.f32 %v1149_v43, %v567_v18  ;;  %v86_v17 = vld [vmem:[#allocation2 + $0x1f8] sm:$0xff] }
  0x58   :  { %v484_v42 = vadd.f32 %v483_v31, %v482_v30  ;;  %v485_v6 = vsel %vm95_vm0, %v846_v47, 0.0  ;;  %v631_v33 = vsub.f32 %v1151_v45, %v567_v18  ;;  %v160_v37 = vmax.f32 %v158_v16, %v159_v22  ;;  %v74_v18 = vld [vmem:[#allocation2 + $0x198] sm:$0xff]  ;;  %v75_v31 = vld [vmem:[#allocation2 + $0x1a0] sm:$0xff] }
  0x59   :  { %679 = vst.msk [vmem:[#allocation5 + $0x38] sm:$0xff] %vm95_vm0, %v607_v1  ;;  %691 = vst.msk [vmem:[#allocation5 + $0x98] sm:$0xff] %vm95_vm0, %v619_v35  ;;  %v163_v36 = vmax.f32 %v161_v59, %v162_v50  ;;  %v164_v29 = vsel %vm95_vm0, %v84_v27, -inf  ;;  %v166_v40 = vsel %vm95_vm0, %v1312_v5, -inf  ;;  %v167_v43 = vsel %vm95_vm0, %v1314_v44, -inf  ;;  %v63_v1 = vld [vmem:[#allocation2 + $0x140] sm:$0xff] }
  0x5a   :  { %v848_v56 = vpop.eup %847  ;;  %v486_v60 = vadd.f32 %v485_v6, %v484_v42  ;;  %703 = vst.msk [vmem:[#allocation5 + $0xf8] sm:$0xff] %vm95_vm0, %v631_v33  ;;  %v1329_v45 = vsub.f32 %v59_v52, %v160_v37  ;;  %v1331_v61 = vsub.f32 %v71_v7, %v160_v37  ;;  %v1333_v48 = vsub.f32 %v83_v53, %v160_v37  ;;  %v87_v35 = vld [vmem:[#allocation2 + $0x200] sm:$0xff]  ;;  %v1376_v33 = vld [vmem:[#allocation2 + $0x148] sm:$0xff] }
  0x5b   :  { %v850_v63 = vpop.eup %849  ;;  %v569_v19 = vmul.f32 0.6931472, %v848_v56  ;;  %v165_v54 = vmax.f32 %v163_v36, %v164_v29  ;;  %v168_v15 = vmax.f32 %v166_v40, %v167_v43  ;;  %v169_v4 = vsel %vm95_vm0, %v85_v32, -inf  ;;  %v1380_v37 = vld [vmem:[#allocation2 + $0x208] sm:$0xff] }
  0x5c   :  { %v852_v2 = vpop.eup %851  ;;  %857 = vlog2.f32 %v486_v60  ;;  %v487_v26 = vsel %vm95_vm0, %v850_v63, 0.0  ;;  %v360_v3 = vmul.f32 1.442695, %v1329_v45  ;;  %v384_v57 = vmul.f32 1.442695, %v1331_v61 }
  0x5d   :  { %v854_v52 = vpop.eup %853  ;;  %v608_v7 = vsub.f32 %v1170_v23, %v569_v19  ;;  %v488_v53 = vsel %vm95_vm0, %v852_v2, 0.0  ;;  %v620_v34 = vsub.f32 %v1172_v24, %v569_v19  ;;  %v632_v13 = vsub.f32 %v1179_v41, %v569_v19 }
  0x5e   :  { %v489_v49 = vadd.f32 %v488_v53, %v487_v26  ;;  %v490_v39 = vsel %vm95_vm0, %v854_v52, 0.0  ;;  %859 = vpow2.f32 %v360_v3  ;;  %v408_v0 = vmul.f32 1.442695, %v1333_v48 }
  0x5f   :  { %680 = vst.msk [vmem:[#allocation5 + $0x40] sm:$0xff] %vm95_vm0, %v608_v7  ;;  %692 = vst.msk [vmem:[#allocation5 + $0xa0] sm:$0xff] %vm95_vm0, %v620_v34  ;;  %861 = vpow2.f32 %v384_v57  ;;  %v1351_v23 = vsub.f32 %v1289_v8, %v165_v54  ;;  %v1354_v24 = vsub.f32 %v1291_v58, %v165_v54  ;;  %v1356_v41 = vsub.f32 %v84_v27, %v165_v54  ;;  %v1401_v7 = vld [vmem:[#allocation2 + $0x150] sm:$0xff] }
  0x60   :  { %704 = vst.msk [vmem:[#allocation5 + $0x100] sm:$0xff] %vm95_vm0, %v632_v13  ;;  %v491_v14 = vadd.f32 %v490_v39, %v489_v49  ;;  %863 = vpow2.f32 %v408_v0  ;;  %v170_v55 = vmax.f32 %v168_v15, %v169_v4  ;;  %v171_v10 = vsel %vm95_vm0, %v1343_v38, -inf }
  0x61   :  { %v856_v22 = vpop.eup %855  ;;  %v362_v20 = vmul.f32 1.442695, %v1351_v23  ;;  %v386_v30 = vmul.f32 1.442695, %v1354_v24  ;;  %v410_v8 = vmul.f32 1.442695, %v1356_v41 }
  0x62   :  { %v571_v16 = vmul.f32 0.6931472, %v856_v22  ;;  %865 = vlog2.f32 %v491_v14  ;;  %v1364_v58 = vsub.f32 %v1312_v5, %v170_v55  ;;  %v1367_v27 = vsub.f32 %v1314_v44, %v170_v55  ;;  %v1378_v44 = vld [vmem:[#allocation2 + $0x1a8] sm:$0xff] }
  0x63   :  { %867 = vpow2.f32 %v362_v20  ;;  %v1369_v59 = vsub.f32 %v85_v32, %v170_v55  ;;  %v172_v50 = vsel %vm95_vm0, %v74_v18, -inf  ;;  %v174_v47 = vsel %vm95_vm0, %v86_v17, -inf }
  0x64   :  { %v609_v42 = vsub.f32 %v1201_v9, %v571_v16  ;;  %v621_v6 = vsub.f32 %v1203_v12, %v571_v16  ;;  %v633_v5 = vsub.f32 %v1207_v21, %v571_v16  ;;  %869 = vpow2.f32 %v386_v30 }
  0x65   :  { %871 = vpow2.f32 %v410_v8  ;;  %v364_v32 = vmul.f32 1.442695, %v1364_v58  ;;  %v388_v36 = vmul.f32 1.442695, %v1367_v27  ;;  %v412_v29 = vmul.f32 1.442695, %v1369_v59 }
  0x66   :  { %v858_v40 = vpop.eup %857  ;;  %681 = vst.msk [vmem:[#allocation5 + $0x48] sm:$0xff] %vm95_vm0, %v609_v42  ;;  %693 = vst.msk [vmem:[#allocation5 + $0xa8] sm:$0xff] %vm95_vm0, %v621_v6  ;;  %v173_v9 = vmax.f32 %v171_v10, %v172_v50  ;;  %v176_v12 = vsel %vm95_vm0, %v63_v1, -inf  ;;  %v177_v21 = vsel %vm95_vm0, %v75_v31, -inf  ;;  %v179_v43 = vsel %vm95_vm0, %v87_v35, -inf }
  0x67   :  { %705 = vst.msk [vmem:[#allocation5 + $0x108] sm:$0xff] %vm95_vm0, %v633_v5  ;;  %v573_v56 = vmul.f32 0.6931472, %v858_v40  ;;  %873 = vpow2.f32 %v364_v32  ;;  %v178_v60 = vmax.f32 %v176_v12, %v177_v21  ;;  %v181_v63 = vsel %vm95_vm0, %v1376_v33, -inf  ;;  %v89_v21 = vld [vmem:[#allocation2 + $0x210] sm:$0xff] }
  0x68   :  { %v860_v19 = vpop.eup %859  ;;  %875 = vpow2.f32 %v388_v36  ;;  %v175_v54 = vmax.f32 %v173_v9, %v174_v47  ;;  %v182_v15 = vsel %vm95_vm0, %v1378_v44, -inf  ;;  %v184_v4 = vsel %vm95_vm0, %v1380_v37, -inf  ;;  %v77_v36 = vld [vmem:[#allocation2 + $0x1b0] sm:$0xff] }
  0x69   :  { %v862_v2 = vpop.eup %861  ;;  %v610_v26 = vsub.f32 %v1224_v46, %v573_v56  ;;  %v622_v3 = vsub.f32 %v1226_v51, %v573_v56  ;;  %v634_v57 = vsub.f32 %v1230_v62, %v573_v56  ;;  %v492_v52 = vsel %vm95_vm0, %v860_v19, 0.0 }
  0x6a   :  { %v864_v53 = vpop.eup %863  ;;  %v493_v34 = vsel %vm95_vm0, %v862_v2, 0.0  ;;  %877 = vpow2.f32 %v412_v29  ;;  %v1405_v13 = vsub.f32 %v1343_v38, %v175_v54  ;;  %v1407_v49 = vsub.f32 %v74_v18, %v175_v54 }
  0x6b   :  { %682 = vst.msk [vmem:[#allocation5 + $0x50] sm:$0xff] %vm95_vm0, %v610_v26  ;;  %694 = vst.msk [vmem:[#allocation5 + $0xb0] sm:$0xff] %vm95_vm0, %v622_v3  ;;  %v494_v46 = vadd.f32 %v493_v34, %v492_v52  ;;  %v495_v51 = vsel %vm95_vm0, %v864_v53, 0.0  ;;  %v1413_v62 = vsub.f32 %v86_v17, %v175_v54  ;;  %v180_v39 = vmax.f32 %v178_v60, %v179_v43  ;;  %v66_v26 = vld [vmem:[#allocation2 + $0x158] sm:$0xff] }
  0x6c   :  { %706 = vst.msk [vmem:[#allocation5 + $0x110] sm:$0xff] %vm95_vm0, %v634_v57  ;;  %v866_v0 = vpop.eup %865  ;;  %v366_v14 = vmul.f32 1.442695, %v1405_v13  ;;  %v390_v38 = vmul.f32 1.442695, %v1407_v49  ;;  %v183_v55 = vmax.f32 %v181_v63, %v182_v15  ;;  %v186_v18 = vsel %vm95_vm0, %v1401_v7, -inf }
  0x6d   :  { %v868_v10 = vpop.eup %867  ;;  %v575_v22 = vmul.f32 0.6931472, %v866_v0  ;;  %v496_v20 = vadd.f32 %v495_v51, %v494_v46  ;;  %v414_v30 = vmul.f32 1.442695, %v1413_v62  ;;  %v1420_v8 = vsub.f32 %v63_v1, %v180_v39  ;;  %v78_v3 = vld [vmem:[#allocation2 + $0x1b8] sm:$0xff] }
  0x6e   :  { %v870_v16 = vpop.eup %869  ;;  %v497_v17 = vsel %vm95_vm0, %v868_v10, 0.0  ;;  %879 = vpow2.f32 %v366_v14  ;;  %v1423_v50 = vsub.f32 %v75_v31, %v180_v39  ;;  %v1425_v47 = vsub.f32 %v87_v35, %v180_v39  ;;  %v1454_v39 = vld [vmem:[#allocation2 + $0x160] sm:$0xff] }
  0x6f   :  { %v872_v42 = vpop.eup %871  ;;  %v611_v6 = vsub.f32 %v1250_v25, %v575_v22  ;;  %v623_v5 = vsub.f32 %v1252_v28, %v575_v22  ;;  %v635_v32 = vsub.f32 %v1254_v11, %v575_v22  ;;  %881 = vlog2.f32 %v496_v20 }
  0x70   :  { %v498_v1 = vsel %vm95_vm0, %v870_v16, 0.0  ;;  %v500_v29 = vsel %vm95_vm0, %v872_v42, 0.0  ;;  %883 = vpow2.f32 %v390_v38  ;;  %v368_v40 = vmul.f32 1.442695, %v1420_v8 }
  0x71   :  { %v874_v31 = vpop.eup %873  ;;  %683 = vst.msk [vmem:[#allocation5 + $0x58] sm:$0xff] %vm95_vm0, %v611_v6  ;;  %695 = vst.msk [vmem:[#allocation5 + $0xb8] sm:$0xff] %vm95_vm0, %v623_v5  ;;  %v499_v25 = vadd.f32 %v498_v1, %v497_v17  ;;  %885 = vpow2.f32 %v414_v30  ;;  %v392_v28 = vmul.f32 1.442695, %v1423_v50  ;;  %v416_v11 = vmul.f32 1.442695, %v1425_v47 }
  0x72   :  { %707 = vst.msk [vmem:[#allocation5 + $0x118] sm:$0xff] %vm95_vm0, %v635_v32  ;;  %v876_v35 = vpop.eup %875  ;;  %v502_v9 = vsel %vm95_vm0, %v874_v31, 0.0  ;;  %887 = vpow2.f32 %v368_v40  ;;  %v185_v12 = vmax.f32 %v183_v55, %v184_v4  ;;  %v187_v43 = vsel %vm95_vm0, %v77_v36, -inf  ;;  %v90_v4 = vld [vmem:[#allocation2 + $0x218] sm:$0xff] }
  0x73   :  { %v501_v56 = vadd.f32 %v500_v29, %v499_v25  ;;  %v503_v60 = vsel %vm95_vm0, %v876_v35, 0.0  ;;  %889 = vpow2.f32 %v392_v28  ;;  %v188_v63 = vmax.f32 %v186_v18, %v187_v43 }
  0x74   :  { %v878_v19 = vpop.eup %877  ;;  %v504_v54 = vadd.f32 %v503_v60, %v502_v9  ;;  %891 = vpow2.f32 %v416_v11  ;;  %v1442_v15 = vsub.f32 %v1376_v33, %v185_v12  ;;  %v1445_v2 = vsub.f32 %v1378_v44, %v185_v12  ;;  %v91_v60 = vld [vmem:[#allocation2 + $0x220] sm:$0xff] }
  0x75   :  { %893 = vlog2.f32 %v501_v56  ;;  %v505_v57 = vsel %vm95_vm0, %v878_v19, 0.0  ;;  %v1449_v52 = vsub.f32 %v1380_v37, %v185_v12  ;;  %v189_v53 = vsel %vm95_vm0, %v89_v21, -inf  ;;  %v79_v12 = vld [vmem:[#allocation2 + $0x1c0] sm:$0xff] }
  0x76   :  { %v506_v34 = vadd.f32 %v505_v57, %v504_v54  ;;  %v370_v46 = vmul.f32 1.442695, %v1442_v15  ;;  %v394_v33 = vmul.f32 1.442695, %v1445_v2  ;;  %v190_v51 = vmax.f32 %v188_v63, %v189_v53  ;;  %v68_v63 = vld [vmem:[#allocation2 + $0x168] sm:$0xff] }
  0x77   :  { %v418_v44 = vmul.f32 1.442695, %v1449_v52  ;;  %v191_v0 = vsel %vm95_vm0, %v66_v26, -inf  ;;  %v192_v14 = vsel %vm95_vm0, %v78_v3, -inf  ;;  %v194_v38 = vsel %vm95_vm0, %v90_v4, -inf  ;;  %v80_v53 = vld [vmem:[#allocation2 + $0x1c8] sm:$0xff] }
  0x78   :  { %v880_v37 = vpop.eup %879  ;;  %895 = vlog2.f32 %v506_v34  ;;  %v1461_v55 = vsub.f32 %v1401_v7, %v190_v51  ;;  %v1463_v18 = vsub.f32 %v77_v36, %v190_v51  ;;  %v1465_v10 = vsub.f32 %v89_v21, %v190_v51 }
  0x79   :  { %v882_v22 = vpop.eup %881  ;;  %v507_v20 = vsel %vm95_vm0, %v880_v37, 0.0  ;;  %897 = vpow2.f32 %v370_v46  ;;  %v193_v30 = vmax.f32 %v191_v0, %v192_v14  ;;  %v196_v16 = vsel %vm95_vm0, %v1454_v39, -inf  ;;  %v92_v0 = vld [vmem:[#allocation2 + $0x228] sm:$0xff]  ;;  %v1496_v14 = vld [vmem:[#allocation2 + $0x170] sm:$0xff] }
  0x7a   :  { %v884_v17 = vpop.eup %883  ;;  %v1470_v42 = vmul.f32 0.6931472, %v882_v22  ;;  %899 = vpow2.f32 %v394_v33  ;;  %v372_v6 = vmul.f32 1.442695, %v1461_v55  ;;  %v396_v7 = vmul.f32 1.442695, %v1463_v18 }
  0x7b   :  { %v886_v5 = vpop.eup %885  ;;  %v508_v32 = vsel %vm95_vm0, %v884_v17, 0.0  ;;  %901 = vpow2.f32 %v418_v44  ;;  %v420_v36 = vmul.f32 1.442695, %v1465_v10  ;;  %v195_v1 = vmax.f32 %v193_v30, %v194_v38 }
  0x7c   :  { %v888_v29 = vpop.eup %887  ;;  %v636_v40 = vsub.f32 %v1329_v45, %v1470_v42  ;;  %v509_v31 = vadd.f32 %v508_v32, %v507_v20  ;;  %v510_v25 = vsel %vm95_vm0, %v886_v5, 0.0  ;;  %903 = vpow2.f32 %v372_v6 }
  0x7d   :  { %v890_v28 = vpop.eup %889  ;;  %v512_v11 = vsel %vm95_vm0, %v888_v29, 0.0  ;;  %905 = vpow2.f32 %v396_v7  ;;  %v1480_v35 = vsub.f32 %v66_v26, %v195_v1  ;;  %v1482_v9 = vsub.f32 %v78_v3, %v195_v1 }
  0x7e   :  { %v892_v21 = vpop.eup %891  ;;  %708 = vst.msk [vmem:[#allocation5 + $0x120] sm:$0xff] %vm95_vm0, %v636_v40  ;;  %v511_v43 = vadd.f32 %v510_v25, %v509_v31  ;;  %v513_v56 = vsel %vm95_vm0, %v890_v28, 0.0  ;;  %907 = vpow2.f32 %v420_v36  ;;  %v1486_v45 = vsub.f32 %v90_v4, %v195_v1 }
  0x7f   :  { %v894_v19 = vpop.eup %893  ;;  %v514_v54 = vadd.f32 %v513_v56, %v512_v11  ;;  %v515_v57 = vsel %vm95_vm0, %v892_v21, 0.0  ;;  %v374_v26 = vmul.f32 1.442695, %v1480_v35  ;;  %v398_v3 = vmul.f32 1.442695, %v1482_v9 }
  0x80   :  { %v1491_v34 = vmul.f32 0.6931472, %v894_v19  ;;  %909 = vlog2.f32 %v511_v43  ;;  %v422_v46 = vmul.f32 1.442695, %v1486_v45  ;;  %v197_v33 = vsel %vm95_vm0, %v79_v12, -inf }
  0x81   :  { %v516_v4 = vadd.f32 %v515_v57, %v514_v54  ;;  %911 = vpow2.f32 %v374_v26  ;;  %v198_v51 = vmax.f32 %v196_v16, %v197_v33  ;;  %v199_v44 = vsel %vm95_vm0, %v91_v60, -inf }
  0x82   :  { %v896_v38 = vpop.eup %895  ;;  %v637_v37 = vsub.f32 %v1351_v23, %v1491_v34  ;;  %913 = vpow2.f32 %v398_v3  ;;  %v201_v22 = vsel %vm95_vm0, %v68_v63, -inf  ;;  %v202_v20 = vsel %vm95_vm0, %v80_v53, -inf  ;;  %v81_v23 = vld [vmem:[#allocation2 + $0x1d0] sm:$0xff] }
  0x83   :  { %v898_v30 = vpop.eup %897  ;;  %v1502_v17 = vmul.f32 0.6931472, %v896_v38  ;;  %915 = vlog2.f32 %v516_v4  ;;  %v200_v6 = vmax.f32 %v198_v51, %v199_v44  ;;  %v203_v16 = vmax.f32 %v201_v22, %v202_v20  ;;  %v93_v44 = vld [vmem:[#allocation2 + $0x230] sm:$0xff] }
  0x84   :  { %v900_v7 = vpop.eup %899  ;;  %709 = vst.msk [vmem:[#allocation5 + $0x128] sm:$0xff] %vm95_vm0, %v637_v37  ;;  %v517_v5 = vsel %vm95_vm0, %v898_v30, 0.0  ;;  %917 = vpow2.f32 %v422_v46  ;;  %v204_v32 = vsel %vm95_vm0, %v92_v0, -inf  ;;  %v206_v36 = vsel %vm95_vm0, %v1496_v14, -inf }
  0x85   :  { %v902_v1 = vpop.eup %901  ;;  %v638_v29 = vsub.f32 %v1364_v58, %v1502_v17  ;;  %v518_v40 = vsel %vm95_vm0, %v900_v7, 0.0  ;;  %v1513_v31 = vsub.f32 %v1454_v39, %v200_v6  ;;  %v1515_v25 = vsub.f32 %v79_v12, %v200_v6  ;;  %v70_v7 = vld [vmem:[#allocation2 + $0x178] sm:$0xff] }
  0x86   :  { %v904_v28 = vpop.eup %903  ;;  %v519_v11 = vadd.f32 %v518_v40, %v517_v5  ;;  %v520_v21 = vsel %vm95_vm0, %v902_v1, 0.0  ;;  %v1518_v43 = vsub.f32 %v91_v60, %v200_v6  ;;  %v205_v56 = vmax.f32 %v203_v16, %v204_v32 }
  0x87   :  { %v906_v19 = vpop.eup %905  ;;  %710 = vst.msk [vmem:[#allocation5 + $0x130] sm:$0xff] %vm95_vm0, %v638_v29  ;;  %v522_v54 = vsel %vm95_vm0, %v904_v28, 0.0  ;;  %v376_v58 = vmul.f32 1.442695, %v1513_v31  ;;  %v400_v57 = vmul.f32 1.442695, %v1515_v25 }
  0x88   :  { %v207_v39 = vsel %vm95_vm0, %v81_v23, -inf  ;;  %v908_v12 = vpop.eup %907  ;;  %v521_v26 = vadd.f32 %v520_v21, %v519_v11  ;;  %v523_v3 = vsel %vm95_vm0, %v906_v19, 0.0  ;;  %v424_v46 = vmul.f32 1.442695, %v1518_v43  ;;  %v94_v19 = vld [vmem:[#allocation2 + $0x238] sm:$0xff] }
  0x89   :  { %v1527_v60 = vsub.f32 %v68_v63, %v205_v56  ;;  %v524_v33 = vadd.f32 %v523_v3, %v522_v54  ;;  %v525_v4 = vsel %vm95_vm0, %v908_v12, 0.0  ;;  %919 = vpow2.f32 %v376_v58 }
  0x8a   :  { %v1530_v51 = vsub.f32 %v80_v53, %v205_v56  ;;  %v910_v38 = vpop.eup %909  ;;  %921 = vlog2.f32 %v521_v26  ;;  %v1532_v37 = vsub.f32 %v92_v0, %v205_v56  ;;  %v208_v20 = vmax.f32 %v206_v36, %v207_v39  ;;  %v82_v56 = vld [vmem:[#allocation2 + $0x1d8] sm:$0xff] }
  0x8b   :  { %v378_v22 = vmul.f32 1.442695, %v1527_v60  ;;  %v912_v30 = vpop.eup %911  ;;  %v1535_v6 = vmul.f32 0.6931472, %v910_v38  ;;  %v526_v16 = vadd.f32 %v525_v4, %v524_v33  ;;  %923 = vpow2.f32 %v400_v57 }
  0x8c   :  { %v402_v63 = vmul.f32 1.442695, %v1530_v51  ;;  %v914_v5 = vpop.eup %913  ;;  %v527_v53 = vsel %vm95_vm0, %v912_v30, 0.0  ;;  %925 = vpow2.f32 %v424_v46  ;;  %v426_v32 = vmul.f32 1.442695, %v1532_v37 }
  0x8d   :  { %v209_v0 = vsel %vm95_vm0, %v93_v44, -inf  ;;  %v916_v1 = vpop.eup %915  ;;  %v639_v36 = vsub.f32 %v1405_v13, %v1535_v6  ;;  %927 = vlog2.f32 %v526_v16  ;;  %v528_v29 = vsel %vm95_vm0, %v914_v5, 0.0 }
  0x8e   :  { %v210_v40 = vmax.f32 %v208_v20, %v209_v0  ;;  %v918_v28 = vpop.eup %917  ;;  %v1544_v11 = vmul.f32 0.6931472, %v916_v1  ;;  %v529_v21 = vadd.f32 %v528_v29, %v527_v53  ;;  %929 = vpow2.f32 %v378_v22 }
  0x8f   :  { %v211_v54 = vsel %vm95_vm0, %v70_v7, -inf  ;;  %711 = vst.msk [vmem:[#allocation5 + $0x138] sm:$0xff] %vm95_vm0, %v639_v36  ;;  %v530_v58 = vsel %vm95_vm0, %v918_v28, 0.0  ;;  %931 = vpow2.f32 %v402_v63  ;;  %v212_v33 = vsel %vm95_vm0, %v82_v56, -inf }
  0x90   :  { %v1550_v13 = vsub.f32 %v1496_v14, %v210_v40  ;;  %v1552_v57 = vsub.f32 %v81_v23, %v210_v40  ;;  %v640_v39 = vsub.f32 %v1420_v8, %v1544_v11  ;;  %v531_v12 = vadd.f32 %v530_v58, %v529_v21 }
  0x91   :  { %933 = vpow2.f32 %v426_v32  ;;  %v1556_v26 = vsub.f32 %v93_v44, %v210_v40  ;;  %v214_v4 = vsel %vm95_vm0, %v94_v19, -inf  ;;  %v213_v23 = vmax.f32 %v211_v54, %v212_v33 }
  0x92   :  { %v380_v3 = vmul.f32 1.442695, %v1550_v13  ;;  %v404_v46 = vmul.f32 1.442695, %v1552_v57  ;;  %712 = vst.msk [vmem:[#allocation5 + $0x140] sm:$0xff] %vm95_vm0, %v640_v39  ;;  %935 = vlog2.f32 %v531_v12  ;;  %v648_v8 = vsub.f32 %v1331_v61, %v1470_v42 }
  0x93   :  { %v428_v14 = vmul.f32 1.442695, %v1556_v26  ;;  %v920_v38 = vpop.eup %919  ;;  %v649_v44 = vsub.f32 %v1354_v24, %v1491_v34  ;;  %v650_v22 = vsub.f32 %v1367_v27, %v1502_v17  ;;  %v651_v20 = vsub.f32 %v1407_v49, %v1535_v6 }
  0x94   :  { %937 = vpow2.f32 %v380_v3  ;;  %v922_v30 = vpop.eup %921  ;;  %v532_v16 = vsel %vm95_vm0, %v920_v38, 0.0  ;;  %v215_v63 = vmax.f32 %v213_v23, %v214_v4  ;;  %720 = vst.msk [vmem:[#allocation5 + $0x180] sm:$0xff] %vm95_vm0, %v648_v8  ;;  %v652_v61 = vsub.f32 %v1423_v50, %v1544_v11 }
  0x95   :  { %939 = vpow2.f32 %v404_v46  ;;  %v924_v5 = vpop.eup %923  ;;  %v587_v53 = vmul.f32 0.6931472, %v922_v30  ;;  %721 = vst.msk [vmem:[#allocation5 + $0x188] sm:$0xff] %vm95_vm0, %v649_v44  ;;  %722 = vst.msk [vmem:[#allocation5 + $0x190] sm:$0xff] %vm95_vm0, %v650_v22  ;;  %v660_v24 = vsub.f32 %v1333_v48, %v1470_v42  ;;  %v661_v27 = vsub.f32 %v1356_v41, %v1491_v34 }
  0x96   :  { %941 = vpow2.f32 %v428_v14  ;;  %723 = vst.msk [vmem:[#allocation5 + $0x198] sm:$0xff] %vm95_vm0, %v651_v20  ;;  %v926_v49 = vpop.eup %925  ;;  %v533_v32 = vsel %vm95_vm0, %v924_v5, 0.0  ;;  %v1584_v0 = vsub.f32 %v70_v7, %v215_v63  ;;  %v1586_v50 = vsub.f32 %v82_v56, %v215_v63  ;;  %724 = vst.msk [vmem:[#allocation5 + $0x1a0] sm:$0xff] %vm95_vm0, %v652_v61 }
  0x97   :  { %v1588_v1 = vsub.f32 %v94_v19, %v215_v63  ;;  %v928_v36 = vpop.eup %927  ;;  %v641_v29 = vsub.f32 %v1442_v15, %v587_v53  ;;  %v534_v40 = vadd.f32 %v533_v32, %v532_v16  ;;  %v535_v48 = vsel %vm95_vm0, %v926_v49, 0.0  ;;  %732 = vst.msk [vmem:[#allocation5 + $0x1e0] sm:$0xff] %vm95_vm0, %v660_v24  ;;  %733 = vst.msk [vmem:[#allocation5 + $0x1e8] sm:$0xff] %vm95_vm0, %v661_v27 }
  0x98   :  { %v653_v42 = vsub.f32 %v1445_v2, %v587_v53  ;;  %v930_v41 = vpop.eup %929  ;;  %v589_v34 = vmul.f32 0.6931472, %v928_v36  ;;  %v382_v7 = vmul.f32 1.442695, %v1584_v0  ;;  %v406_v28 = vmul.f32 1.442695, %v1586_v50 }
  0x99   :  { %v662_v21 = vsub.f32 %v1369_v59, %v1502_v17  ;;  %v932_v56 = vpop.eup %931  ;;  %713 = vst.msk [vmem:[#allocation5 + $0x148] sm:$0xff] %vm95_vm0, %v641_v29  ;;  %v536_v15 = vadd.f32 %v535_v48, %v534_v40  ;;  %v537_v19 = vsel %vm95_vm0, %v930_v41, 0.0  ;;  %v430_v2 = vmul.f32 1.442695, %v1588_v1 }
  0x9a   :  { %725 = vst.msk [vmem:[#allocation5 + $0x1a8] sm:$0xff] %vm95_vm0, %v653_v42  ;;  %v663_v54 = vsub.f32 %v1413_v62, %v1535_v6  ;;  %v642_v39 = vsub.f32 %v1461_v55, %v589_v34  ;;  %v538_v12 = vsel %vm95_vm0, %v932_v56, 0.0  ;;  %943 = vpow2.f32 %v382_v7 }
  0x9b   :  { %v934_v58 = vpop.eup %933  ;;  %v654_v59 = vsub.f32 %v1463_v18, %v589_v34  ;;  %734 = vst.msk [vmem:[#allocation5 + $0x1f0] sm:$0xff] %vm95_vm0, %v662_v21  ;;  %945 = vlog2.f32 %v536_v15  ;;  %v539_v17 = vadd.f32 %v538_v12, %v537_v19  ;;  %v664_v46 = vsub.f32 %v1425_v47, %v1544_v11 }
  0x9c   :  { %v540_v3 = vsel %vm95_vm0, %v934_v58, 0.0  ;;  %735 = vst.msk [vmem:[#allocation5 + $0x1f8] sm:$0xff] %vm95_vm0, %v663_v54  ;;  %v936_v62 = vpop.eup %935  ;;  %714 = vst.msk [vmem:[#allocation5 + $0x150] sm:$0xff] %vm95_vm0, %v642_v39  ;;  %947 = vpow2.f32 %v406_v28  ;;  %v665_v55 = vsub.f32 %v1449_v52, %v587_v53  ;;  %v666_v18 = vsub.f32 %v1465_v10, %v589_v34 }
  0x9d   :  { %726 = vst.msk [vmem:[#allocation5 + $0x1b0] sm:$0xff] %vm95_vm0, %v654_v59  ;;  %v591_v33 = vmul.f32 0.6931472, %v936_v62  ;;  %v541_v4 = vadd.f32 %v540_v3, %v539_v17  ;;  %949 = vpow2.f32 %v430_v2  ;;  %736 = vst.msk [vmem:[#allocation5 + $0x200] sm:$0xff] %vm95_vm0, %v664_v46 }
  0x9e   :  { %v938_v6 = vpop.eup %937  ;;  %737 = vst.msk [vmem:[#allocation5 + $0x208] sm:$0xff] %vm95_vm0, %v665_v55  ;;  %738 = vst.msk [vmem:[#allocation5 + $0x210] sm:$0xff] %vm95_vm0, %v666_v18 }
  0x9f   :  { %v940_v14 = vpop.eup %939  ;;  %v542_v23 = vsel %vm95_vm0, %v938_v6, 0.0  ;;  %v643_v11 = vsub.f32 %v1480_v35, %v591_v33  ;;  %951 = vlog2.f32 %v541_v4  ;;  %v655_v10 = vsub.f32 %v1482_v9, %v591_v33 }
  0xa0   :  { %v942_v47 = vpop.eup %941  ;;  %v543_v52 = vsel %vm95_vm0, %v940_v14, 0.0  ;;  %v667_v44 = vsub.f32 %v1486_v45, %v591_v33 }
  0xa1   :  { %v544_v8 = vadd.f32 %v543_v52, %v542_v23  ;;  %v545_v38 = vsel %vm95_vm0, %v942_v47, 0.0  ;;  %715 = vst.msk [vmem:[#allocation5 + $0x158] sm:$0xff] %vm95_vm0, %v643_v11  ;;  %727 = vst.msk [vmem:[#allocation5 + $0x1b8] sm:$0xff] %vm95_vm0, %v655_v10 }
  0xa2   :  { %739 = vst.msk [vmem:[#allocation5 + $0x218] sm:$0xff] %vm95_vm0, %v667_v44 }
  0xa3   :  { %v546_v22 = vadd.f32 %v545_v38, %v544_v8 }
  0xa4   :  { %v944_v20 = vpop.eup %943 }
  0xa5   :  { %953 = vlog2.f32 %v546_v22  ;;  %v946_v35 = vpop.eup %945  ;;  %v547_v30 = vsel %vm95_vm0, %v944_v20, 0.0 }
  0xa6   :  { %v948_v16 = vpop.eup %947  ;;  %v593_v63 = vmul.f32 0.6931472, %v946_v35 }
  0xa7   :  { %v950_v9 = vpop.eup %949  ;;  %v548_v61 = vsel %vm95_vm0, %v948_v16, 0.0 }
  0xa8   :  { %v644_v5 = vsub.f32 %v1513_v31, %v593_v63  ;;  %v549_v45 = vadd.f32 %v548_v61, %v547_v30  ;;  %v550_v53 = vsel %vm95_vm0, %v950_v9, 0.0  ;;  %v656_v24 = vsub.f32 %v1515_v25, %v593_v63 }
  0xa9   :  { %v952_v27 = vpop.eup %951  ;;  %v668_v49 = vsub.f32 %v1518_v43, %v593_v63 }
  0xaa   :  { %716 = vst.msk [vmem:[#allocation5 + $0x160] sm:$0xff] %vm95_vm0, %v644_v5  ;;  %v595_v32 = vmul.f32 0.6931472, %v952_v27  ;;  %v551_v36 = vadd.f32 %v550_v53, %v549_v45  ;;  %728 = vst.msk [vmem:[#allocation5 + $0x1c0] sm:$0xff] %vm95_vm0, %v656_v24 }
  0xab   :  { %740 = vst.msk [vmem:[#allocation5 + $0x220] sm:$0xff] %vm95_vm0, %v668_v49 }
  0xac   :  { %v645_v29 = vsub.f32 %v1527_v60, %v595_v32  ;;  %955 = vlog2.f32 %v551_v36  ;;  %v657_v31 = vsub.f32 %v1530_v51, %v595_v32  ;;  %v669_v40 = vsub.f32 %v1532_v37, %v595_v32 }
  0xae   :  { %717 = vst.msk [vmem:[#allocation5 + $0x168] sm:$0xff] %vm95_vm0, %v645_v29  ;;  %729 = vst.msk [vmem:[#allocation5 + $0x1c8] sm:$0xff] %vm95_vm0, %v657_v31 }
  0xaf   :  { %v954_v48 = vpop.eup %953  ;;  %741 = vst.msk [vmem:[#allocation5 + $0x228] sm:$0xff] %vm95_vm0, %v669_v40 }
  0xb0   :  { %v597_v25 = vmul.f32 0.6931472, %v954_v48 }
  0xb2   :  { %v646_v43 = vsub.f32 %v1550_v13, %v597_v25  ;;  %v658_v42 = vsub.f32 %v1552_v57, %v597_v25  ;;  %v670_v41 = vsub.f32 %v1556_v26, %v597_v25 }
  0xb4   :  { %718 = vst.msk [vmem:[#allocation5 + $0x170] sm:$0xff] %vm95_vm0, %v646_v43  ;;  %730 = vst.msk [vmem:[#allocation5 + $0x1d0] sm:$0xff] %vm95_vm0, %v658_v42 }
  0xb5   :  { %742 = vst.msk [vmem:[#allocation5 + $0x230] sm:$0xff] %vm95_vm0, %v670_v41 }
  0xb6   :  { %v956_v60 = vpop.eup %955 }
  0xb7   :  { %v599_v51 = vmul.f32 0.6931472, %v956_v60 }
  0xb9   :  { %v647_v37 = vsub.f32 %v1584_v0, %v599_v51  ;;  %v659_v34 = vsub.f32 %v1586_v50, %v599_v51  ;;  %v671_v13 = vsub.f32 %v1588_v1, %v599_v51 }
  0xbb   :  { %719 = vst.msk [vmem:[#allocation5 + $0x178] sm:$0xff] %vm95_vm0, %v647_v37  ;;  %731 = vst.msk [vmem:[#allocation5 + $0x1d8] sm:$0xff] %vm95_vm0, %v659_v34 }
  0xbc   :  { %743 = vst.msk [vmem:[#allocation5 + $0x238] sm:$0xff] %vm95_vm0, %v671_v13 }
  0xbd   :  { %990 = shalt.err (!%p987_p12)
}
  0xbe   :  { %s991_s24 = scalar_lea.hbm %s1673_s1, 9216 }
  0xbf   :  { %p992_p13 = scmp.ne.s32.totalorder %s1673_s1, %s991_s24  ;;  %p995_p0 = scmp.lt.u32.totalorder %s991_s24, %s1673_s1 }
  0xc1   :  { %p997_p1 = pnand %p995_p0, %p992_p13 }
  0xc3   :  { %1000 = shalt.err (!%p997_p1)
}
  0xc4   :  { %755 = dma.vmem_to_hbm [thread:$0]  %s750_s20, 9216, %s1673_s1, [#allocation4], %s1006_s16, %s1006_s16, %s1007_s17  }
  0xc5   :  { %1003 = dma.done.wait [#allocation4], 9216  }
  0xc6   :  { %1004 = vsyncadd [#allocation4], 4294958080 }
  0xc7   :  { %759 = vsyncpa [#allocation3], 1 }
  0xc8   :  { %760 = vsyncpa [#allocation4], 1 }

</bundles_post_ra>
